<compile_context>
chip_gen: v6e
topology: v6e:2x2x1
jax: 0.10.0
libtpu: 0.0.40
codegen_flags: <defaults>
</compile_context>

<pallas_src>
import functools
import math

import jax
import jax.numpy as jnp
from jax import lax
from jax.experimental import pallas as pl
from jax.experimental.pallas import tpu as pltpu


_TARGET_TILE_BYTES = 8 * 1024 * 1024   # ~8 MiB input tile per grid step (amortizes step overhead)
_POOL_BYTES_CAP = 2 * 1024 * 1024      # cap on the (G*W, G) bf16 segmented-sum matrix
_MAX_GROUPS_PER_ROW = 128              # G cap: full-lane-width output, MXU never binding
_VMEM_BUDGET_CAP = 40 * 1024 * 1024    # cap on the estimated per-step VMEM working set
_VMEM_LIMIT_CAP = 56 * 1024 * 1024     # explicit scoped-VMEM limit (< v7x 64 MiB physical)
_F32_POW_CLAMP = 3.0e38                # keep x**p finite (also finite as bf16) for the MXU sum


def _round_up(a, b):
    return -(-a // b) * b


def _gemp_kernel(x_ref, pool_ref, o_ref, *, p, eps, inv_w):
    """One (block_rows, G*W) lane-dense slab tile -> (block_rows, G) pooled outputs."""
    x = x_ref[...].astype(jnp.float32)
    x = jnp.maximum(x, jnp.float32(eps))                  # clamp(min=eps)            (VPU)
    if float(p).is_integer() and 1.0 <= float(p) <= 64.0:
        xp = lax.integer_pow(x, int(p))                   # repeated multiplies       (VPU)
    else:
        xp = jnp.exp(jnp.float32(p) * jnp.log(x))         # x ** p  (x > 0)           (EUP)
    # TODO(synk): if x**p overflows f32 the reference yields inf; we clamp to a huge finite
    # value instead (inf * 0 inside the segmented-sum matmul would otherwise produce NaN).
    xp = jnp.minimum(xp, jnp.float32(_F32_POW_CLAMP))
    # Segmented sum of each group of W consecutive lanes via one single-pass bf16 MXU matmul
    # (f32 accumulation):  s[b, g] = sum_w xp[b, g*W + w].  pool is an exact 0/1 bf16 matrix.
    s = jnp.dot(xp.astype(jnp.bfloat16), pool_ref[...], preferred_element_type=jnp.float32)
    m = s * jnp.float32(inv_w)                            # mean over W
    inv_p = 1.0 / float(p)
    if inv_p == 1.0:
        r = m
    elif inv_p == 0.5:
        r = jnp.sqrt(m)
    else:
        r = jnp.exp(jnp.float32(inv_p) * jnp.log(m))      # m ** (1/p)                (EUP)
    o_ref[...] = r.astype(o_ref.dtype)


def _choose_groups(rows, w):
    """Pick G (groups packed per slab row) and how many groups of eps-padding are needed.

    Prefers a zero-copy divisor of `rows`; falls back to G = g_max with a small padded tail
    when the best divisor would leave the tiles badly lane-sparse (prime-ish rows)."""
    cap_pool = max(1, math.isqrt(max(1, _POOL_BYTES_CAP // (2 * w))))   # (g*w, g) bf16 matrix
    g_max = max(1, min(_MAX_GROUPS_PER_ROW, cap_pool, rows))
    g_div = 1
    for g in range(g_max, 0, -1):
        if rows % g == 0:
            g_div = g
            break
    # Zero-copy path when the divisor is still lane-dense: >= 2 full vregs of input lanes and
    # at least half of the max output lane width.
    if g_div == g_max or (g_div * w >= 256 and 2 * g_div >= g_max):
        return g_div, 0
    return g_max, (-rows) % g_max


def gemp(x, p=4.6, eps=1e-8, emb_dim=None, *, target_tile_bytes=_TARGET_TILE_BYTES):
    """Pallas TPU gemp.forward: (mean over last axis of clamp(x, eps)**p) ** (1/p), keepdims."""
    if x.ndim < 2:
        raise ValueError("gemp expects an input with at least 2 dims (..., H, W)")
    if emb_dim is not None and emb_dim != x.shape[-2]:
        # TODO(synk): general AdaptiveAvgPool2d re-binning over H when emb_dim not in {None, H}.
        raise NotImplementedError("only emb_dim=None (or emb_dim == H) is supported")

    orig_dtype = x.dtype
    w = x.shape[-1]
    rows = math.prod(x.shape[:-1])
    out_shape = x.shape[:-1] + (1,)

    if rows == 0 or w == 0:   # degenerate empty input
        return (jnp.mean(jnp.maximum(x, eps) ** p, axis=-1, keepdims=True) ** (1.0 / p))

    # ---- lane-dense packing: G whole reduction groups (G*W contiguous elems) per slab row ----
    g, pad_groups = _choose_groups(rows, w)
    lanes = g * w
    rows_p = rows + pad_groups
    slab_rows = rows_p // g
    if pad_groups:
        # Awkward (prime-ish) rows: pad the flat tail with eps so every slab row is full.
        # Padded groups only affect their own (discarded) outputs.
        flat = jnp.pad(x.reshape(rows * w), (0, pad_groups * w), constant_values=float(eps))
        x2d = flat.reshape(slab_rows, lanes)
    else:
        x2d = x.reshape(slab_rows, lanes)     # free reshape of the contiguous array

    # Constant segmented-sum matrix (exact in bf16): pool[j, k] = 1 iff j // W == k.
    pool = (jnp.arange(lanes, dtype=jnp.int32)[:, None] // w
            == jnp.arange(g, dtype=jnp.int32)[None, :]).astype(jnp.bfloat16)
    pool_bytes = lanes * g * 2

    # ---- tile sizing ----
    itemsize = jnp.dtype(x.dtype).itemsize
    out_itemsize = jnp.dtype(orig_dtype).itemsize
    row_align = max(8, 32 // itemsize)        # f32 -> 8 sublanes, bf16 -> 16, int8/fp8 -> 32
    row_bytes = lanes * itemsize
    block_rows = max(row_align, (int(target_tile_bytes) // row_bytes) // row_align * row_align)

    # Keep the per-step working set (2x input bufs + f32/bf16 temps + pool + 2x output bufs)
    # within the VMEM budget regardless of target_tile_bytes.
    per_row_vmem = lanes * (2 * itemsize + 4 + 2) + 2 * g * max(4, out_itemsize)
    rows_cap = max(row_align,
                   ((_VMEM_BUDGET_CAP - pool_bytes) // per_row_vmem) // row_align * row_align)
    block_rows = min(block_rows, rows_cap)

    if block_rows >= slab_rows:
        block_rows = slab_rows                # single step: no forced split (v5e/v6e single-TC)
    else:
        steps = pl.cdiv(slab_rows, block_rows)
        if steps % 2 == 1:
            # Prefer an even step count so a 2-TC (v7x) split of the "parallel" axis balances.
            even_rows = _round_up(pl.cdiv(slab_rows, steps + 1), row_align)
            block_rows = max(row_align, min(block_rows, even_rows))
    grid = (pl.cdiv(slab_rows, block_rows),)

    # Explicit scoped-VMEM limit: safe on v5e (16 MiB default) and below v7x physical (64 MiB).
    est_vmem = (2 * block_rows * row_bytes + block_rows * lanes * (4 + 2)
                + pool_bytes + 2 * block_rows * g * max(4, out_itemsize))
    vmem_limit = int(min(_VMEM_LIMIT_CAP, max(32 << 20, est_vmem * 3 // 2)))

    # Advisory cost estimate: memory/EUP heavy, MXU light.
    p_is_int = float(p).is_integer() and 1.0 <= float(p) <= 64.0
    n_elems = slab_rows * lanes
    cost = pl.CostEstimate(
        flops=2 * n_elems * g + 6 * n_elems,
        transcendentals=(0 if p_is_int else 2 * n_elems) + 2 * slab_rows * g,
        bytes_accessed=n_elems * itemsize + pool_bytes + slab_rows * g * out_itemsize,
    )

    kernel = functools.partial(_gemp_kernel, p=float(p), eps=float(eps), inv_w=1.0 / w)

    out2d = pl.pallas_call(
        kernel,
        out_shape=jax.ShapeDtypeStruct((slab_rows, g), orig_dtype),
        grid_spec=pltpu.PrefetchScalarGridSpec(
            num_scalar_prefetch=0,
            grid=grid,
            in_specs=[
                # Input slab tile (~8 MiB default), double-buffered by the pipeline.
                pl.BlockSpec((block_rows, lanes), lambda i: (i, 0)),
                # Pooling matrix: constant block index -> fetch once, single-buffered.
                pl.BlockSpec((lanes, g), lambda i: (0, 0), pipeline_mode=pl.Buffered(1)),
            ],
            out_specs=pl.BlockSpec((block_rows, g), lambda i: (i, 0)),
        ),
        compiler_params=pltpu.CompilerParams(
            dimension_semantics=("parallel",),
            vmem_limit_bytes=vmem_limit,
        ),
        cost_estimate=cost,
    )(x2d, pool)

    out = out2d.reshape(rows_p, 1)
    if pad_groups:
        out = out[:rows]
    return out.reshape(out_shape)


if __name__ == "__main__":
    def reference(x, p, eps):
        xp = jnp.maximum(x, eps) ** p
        return jnp.mean(xp, axis=-1, keepdims=True) ** (1.0 / p)

    p, eps = 4.6, 1e-8

    # 1) Small NCHW feature map, as fed to gemp in the UMF / SuperGlobal pipeline.
    x = jax.random.normal(jax.random.PRNGKey(0), (2, 4, 16, 16), dtype=jnp.float32)
    out = jax.block_until_ready(gemp(x, p=p, eps=eps))
    assert out.shape == (2, 4, 16, 1) and out.dtype == x.dtype
    assert bool(jnp.allclose(out, reference(x, p, eps), rtol=2e-3, atol=1e-6)), "mismatch (1)"

    # 2) Multi-step grid with a ragged final row-block (small target tile forces >1 step).
    x2 = jax.random.normal(jax.random.PRNGKey(1), (2, 17, 64, 16), dtype=jnp.float32)
    out2 = jax.block_until_ready(gemp(x2, p=p, eps=eps, target_tile_bytes=64 * 1024))
    assert out2.shape == (2, 17, 64, 1) and out2.dtype == x2.dtype
    assert bool(jnp.allclose(out2, reference(x2, p, eps), rtol=2e-3, atol=1e-6)), "mismatch (2)"

    # 3) Awkward (prime-ish) rows: exercises the eps-padded lane-dense fallback path.
    x3 = jax.random.normal(jax.random.PRNGKey(2), (1, 3, 131, 16), dtype=jnp.float32)
    out3 = jax.block_until_ready(gemp(x3, p=p, eps=eps))
    assert out3.shape == (1, 3, 131, 1) and out3.dtype == x3.dtype
    assert bool(jnp.allclose(out3, reference(x3, p, eps), rtol=2e-3, atol=1e-6)), "mismatch (3)"

    # 4) Integer p exercises the VPU integer_pow fast path (no EUP log/exp for the pow).
    out4 = jax.block_until_ready(gemp(x, p=3.0, eps=eps))
    assert bool(jnp.allclose(out4, reference(x, 3.0, eps), rtol=2e-3, atol=1e-6)), "mismatch (4)"

    print("KERNEL_OK")
</pallas_src>

<mosaic_0001>
module attributes {stable_mosaic.version = 11 : i64} {
  func.func @_gemp_kernel(%arg0: i32, %arg1: memref<1x2048xf32, #tpu.memory_space<vmem>>, %arg2: memref<2048x128xbf16, #tpu.memory_space<vmem>>, %arg3: memref<1x128xf32, #tpu.memory_space<vmem>>) attributes {dimension_semantics = [#tpu.dimension_semantics<parallel>], iteration_bounds = array<i64: 1>, scalar_prefetch = 0 : i64, scratch_operands = 0 : i64, tpu.core_type = #tpu.core_type<tc>, window_params = [{transform_indices = @transform_0, window_bounds = array<i64: 1, 2048>}, {pipeline_mode = #tpu.pipeline_mode<synchronous>, transform_indices = @transform_1, window_bounds = array<i64: 2048, 128>}, {transform_indices = @transform_2, window_bounds = array<i64: 1, 128>}]} {
    %c0 = arith.constant 0 : index
    %c0_0 = arith.constant 0 : index
    %0 = vector.load %arg1[%c0, %c0_0] : memref<1x2048xf32, #tpu.memory_space<vmem>>, vector<1x2048xf32>
    %cst = arith.constant 9.99999993E-9 : f32
    %1 = vector.broadcast %cst : f32 to vector<1x2048xf32>
    %2 = arith.maximumf %0, %1 : vector<1x2048xf32>
    %3 = math.log %2 : vector<1x2048xf32>
    %cst_1 = arith.constant 4.600000e+00 : f32
    %4 = vector.broadcast %cst_1 : f32 to vector<1x2048xf32>
    %5 = arith.mulf %4, %3 : vector<1x2048xf32>
    %6 = math.exp %5 : vector<1x2048xf32>
    %cst_2 = arith.constant 3.000000e+38 : f32
    %7 = vector.broadcast %cst_2 : f32 to vector<1x2048xf32>
    %8 = arith.minimumf %6, %7 : vector<1x2048xf32>
    %9 = arith.truncf %8 : vector<1x2048xf32> to vector<1x2048xbf16>
    %c0_3 = arith.constant 0 : index
    %c0_4 = arith.constant 0 : index
    %10 = vector.load %arg2[%c0_3, %c0_4] : memref<2048x128xbf16, #tpu.memory_space<vmem>>, vector<2048x128xbf16>
    %cst_5 = arith.constant dense<0.000000e+00> : vector<1x128xf32>
    %11 = tpu.matmul %9, %10, %cst_5 {dimension_numbers = #tpu.dot_dimension_numbers<[1], [0], [0], [1], [0, 0, 1, 1], [], []>} : vector<1x2048xbf16>, vector<2048x128xbf16>, vector<1x128xf32> -> vector<1x128xf32>
    %cst_6 = arith.constant 6.250000e-02 : f32
    %12 = vector.broadcast %cst_6 : f32 to vector<1x128xf32>
    %13 = arith.mulf %11, %12 : vector<1x128xf32>
    %14 = math.log %13 : vector<1x128xf32>
    %cst_7 = arith.constant 0.217391297 : f32
    %15 = vector.broadcast %cst_7 : f32 to vector<1x128xf32>
    %16 = arith.mulf %15, %14 : vector<1x128xf32>
    %17 = math.exp %16 : vector<1x128xf32>
    %c0_8 = arith.constant 0 : index
    %c0_9 = arith.constant 0 : index
    %18 = vector.load %arg3[%c0_8, %c0_9] : memref<1x128xf32, #tpu.memory_space<vmem>>, vector<1x128xf32>
    tpu.vector_store %arg3[%c0_8, %c0_9], %17 {strides = array<i32>} : memref<1x128xf32, #tpu.memory_space<vmem>>, vector<1x128xf32>,
    return
  }
  func.func @transform_0(%arg0: i32) -> (i32, i32) {
    %c0_i32 = arith.constant 0 : i32
    %c0_i32_0 = arith.constant 0 : i32
    return %arg0, %c0_i32 : i32, i32
  }
  func.func @transform_1(%arg0: i32) -> (i32, i32) {
    %c0_i32 = arith.constant 0 : i32
    %c0_i32_0 = arith.constant 0 : i32
    %c0_i32_1 = arith.constant 0 : i32
    return %c0_i32, %c0_i32_0 : i32, i32
  }
  func.func @transform_2(%arg0: i32) -> (i32, i32) {
    %c0_i32 = arith.constant 0 : i32
    %c0_i32_0 = arith.constant 0 : i32
    return %arg0, %c0_i32 : i32, i32
  }
}

</mosaic_0001>

<bundles_post_ra>
// kernel: tpu_custom_call.1
= control target key start
LH: loop header
LB: loop body
LE: loop exit
PB: predicated region body
PF: predicated region fallthrough
CT: control target
= control target key end

     0   :  { %7 = vsyncpa [#allocation3], 0  ;;  %s2126_s0 = inlined_call_operand.hbm [shape: f32[1,2048], index: 0, kind: input, shape index: {}]   ;;  %s2127_s1 = inlined_call_operand.hbm [shape: bf16[2048,128], index: 1, kind: input, shape index: {}]   ;;  %s2128_s2 = inlined_call_operand.hbm [shape: f32[1,128], index: 2, kind: output, shape index: {}]  }
   0x1   :  { %8 = vsyncpa [#allocation6], 0 }
   0x2   :  { %9 = vsyncpa [#allocation4], 0  ;;  %s2035_s9 = smov [#allocation2]   ;;  %s2036_s11 = smov [#allocation5]  }
   0x3   :  { %s16_s10 = sshll.u32 %s2035_s9, 4  ;;  %s25_s12 = sshll.u32 %s2036_s11, 4  ;;  %s17_s10 = int_to_ptr.vmem [resolvable:$true] %s16_s10  ;;  %s26_s12 = int_to_ptr.vmem [resolvable:$true] %s25_s12 }
   0x4   :  { %s1977_s13 = scalar_lea.vmem %s17_s10, 256  ;;  %p1982_p1 = scmp.lt.s32.totalorder %s17_s10, %s17_s10 }
   0x5   :  { %p1978_p0 = scmp.ne.s32.totalorder %s17_s10, %s1977_s13  ;;  %p1983_p2 = scmp.lt.s32.totalorder %s1977_s13, %s1977_s13 }
   0x7   :  { %p1984_p3 = por %p1983_p2, %p1982_p1 }
   0x9   :  { %p1985_p4 = pnand %p1984_p3, %p1978_p0 }
   0xb   :  { %1988 = shalt.err (!%p1985_p4)
}
   0xc   :  { %19 = dma.hbm_to_vmem [thread:$0]  %s2126_s0, 256, %s17_s10, [#allocation3]  }
   0xd   :  { %s1997_s16 = scalar_lea.vmem %s26_s12, 16384  ;;  %p2002_p6 = scmp.lt.s32.totalorder %s26_s12, %s26_s12 }
   0xe   :  { %p1998_p5 = scmp.ne.s32.totalorder %s26_s12, %s1997_s16  ;;  %p2003_p7 = scmp.lt.s32.totalorder %s1997_s16, %s1997_s16 }
  0x10   :  { %p2004_p8 = por %p2003_p7, %p2002_p6 }
  0x12   :  { %p2005_p9 = pnand %p2004_p8, %p1998_p5 }
  0x14   :  { %2008 = shalt.err (!%p2005_p9)
}
  0x15   :  { %s2037_s17 = smov 64   ;;  %s2038_s18 = smov 4  }
  0x16   :  { %31 = dma.hbm_to_vmem [thread:$0]  %s2127_s1, 16384, %s26_s12, [#allocation6], %s2037_s17, %s2037_s17, %s2038_s18  }
  0x17   :  { %2029 = dma.done.wait [#allocation3], 256  }
  0x18   :  { %2030 = vsyncadd [#allocation3], 4294967040 }
  0x19   :  { %2031 = dma.done.wait [#allocation6], 16384  }
  0x1a   :  { %2032 = vsyncadd [#allocation6], 4294950912  ;;  %v1829_v0 = vld [vmem:[#allocation5 + $0x78] sm:$0xff]   ;;  %v1833_v4 = vld [vmem:[#allocation5 + $0x70] sm:$0xff]   ;;  %v57_v40 = vlaneseq  ;;  %s2039_s0 = smov [#allocation7]  }
  0x1b   :  { %v1830_v1 = vld [vmem:[#allocation5 + $0xf8] sm:$0xff]   ;;  %1648 = vmatprep.subr.bf16.mxu0 %v1829_v0  ;;  %v1834_v5 = vld [vmem:[#allocation5 + $0xf0] sm:$0xff]   ;;  %v1837_v8 = vld [vmem:[#allocation5 + $0x68] sm:$0xff]   ;;  %s1510_s1 = sshll.u32 %s2039_s0, 4  ;;  %s1511_s1 = int_to_ptr.vmem [resolvable:$true] %s1510_s1 }
  0x1c   :  { %v1831_v2 = vld [vmem:[#allocation5 + $0x38] sm:$0xff]   ;;  %1670 = vmatprep.subr.bf16.mxu1 %v1830_v1  ;;  %v1835_v6 = vld [vmem:[#allocation5 + $0x30] sm:$0xff]   ;;  %v1838_v9 = vld [vmem:[#allocation5 + $0xe8] sm:$0xff]   ;;  %v2061_v41 = vshrl.u32 %v57_v40, 7  ;;  %s2009_s21 = scalar_lea.vmem %s1511_s1, 16  ;;  %s2013_s22 = scalar_lea.vmem %s1511_s1, 32 }
  0x1d   :  { %v1832_v3 = vld [vmem:[#allocation5 + $0xb8] sm:$0xff]   ;;  %1649 = vmatpush3.bf16.msra.mxu0 %v1831_v2  ;;  %v1836_v7 = vld [vmem:[#allocation5 + $0xb0] sm:$0xff]   ;;  %v1839_v10 = vld [vmem:[#allocation5 + $0x28] sm:$0xff]   ;;  %p2010_p10 = scmp.ne.s32.totalorder %s1511_s1, %s2009_s21  ;;  %p2014_p11 = scmp.lt.s32.totalorder %s1511_s1, %s1511_s1 }
  0x1e   :  { %1671 = vmatpush3.bf16.msra.mxu1 %v1832_v3  ;;  %1650 = vmatprep.subr.bf16.mxu0 %v1833_v4  ;;  %v1840_v11 = vld [vmem:[#allocation5 + $0xa8] sm:$0xff]   ;;  %v1841_v12 = vld [vmem:[#allocation5 + $0x60] sm:$0xff]   ;;  %v1845_v16 = vld [vmem:[#allocation5 + $0x58] sm:$0xff]   ;;  %v63_v42 = vsub.s32 1, %v2061_v41  ;;  %v71_v43 = vsub.s32 3, %v2061_v41  ;;  %v59_v44 = vsub.s32 0, %v2061_v41  ;;  %p2015_p12 = scmp.lt.s32.totalorder %s2013_s22, %s2009_s21 }
  0x1f   :  { %1672 = vmatprep.subr.bf16.mxu1 %v1834_v5  ;;  %v1842_v13 = vld [vmem:[#allocation5 + $0xe0] sm:$0xff]   ;;  %v1846_v17 = vld [vmem:[#allocation5 + $0xd8] sm:$0xff]   ;;  %v1849_v20 = vld [vmem:[#allocation5 + $0x50] sm:$0xff]   ;;  %v67_v45 = vsub.s32 2, %v2061_v41  ;;  %v79_v47 = vsub.s32 5, %v2061_v41  ;;  %v87_v48 = vsub.s32 7, %v2061_v41 }
  0x20   :  { %v1843_v14 = vld [vmem:[#allocation5 + $0x20] sm:$0xff]   ;;  %v1847_v18 = vld [vmem:[#allocation5 + $0x18] sm:$0xff]   ;;  %v1850_v21 = vld [vmem:[#allocation5 + $0xd0] sm:$0xff]   ;;  %p2016_p13 = por %p2015_p12, %p2014_p11 }
  0x21   :  { %1651 = vmatpush3.bf16.msra.mxu0 %v1835_v6  ;;  %v1844_v15 = vld [vmem:[#allocation5 + $0xa0] sm:$0xff]   ;;  %v1848_v19 = vld [vmem:[#allocation5 + $0x98] sm:$0xff]   ;;  %v1851_v22 = vld [vmem:[#allocation5 + $0x10] sm:$0xff]  }
  0x22   :  { %1673 = vmatpush3.bf16.msra.mxu1 %v1836_v7  ;;  %1652 = vmatprep.subr.bf16.mxu0 %v1837_v8  ;;  %v1852_v23 = vld [vmem:[#allocation5 + $0x90] sm:$0xff]   ;;  %v1853_v24 = vld [vmem:[#allocation5 + $0x48] sm:$0xff]   ;;  %v1857_v28 = vld [vmem:[#allocation5 + $0x40] sm:$0xff]   ;;  %p2017_p0 = pnand %p2016_p13, %p2010_p10 }
  0x23   :  { %1674 = vmatprep.subr.bf16.mxu1 %v1838_v9  ;;  %v1854_v25 = vld [vmem:[#allocation5 + $0xc8] sm:$0xff]   ;;  %v1858_v29 = vld [vmem:[#allocation5 + $0xc0] sm:$0xff]   ;;  %v39_v32 = vld [vmem:[#allocation2] sm:$0xff] }
  0x24   :  { %v1855_v26 = vld [vmem:[#allocation5 + $0x8] sm:$0xff]   ;;  %v1859_v30 = vld [vmem:[#allocation5] sm:$0xff]   ;;  %v41_v33 = vmax.f32 %v39_v32, 1e-08  ;;  %v1861_v34 = vld [vmem:[#allocation5 + $0x178] sm:$0xff]  }
  0x25   :  { %1653 = vmatpush3.bf16.msra.mxu0 %v1839_v10  ;;  %v1856_v27 = vld [vmem:[#allocation5 + $0x88] sm:$0xff]   ;;  %v1860_v31 = vld [vmem:[#allocation5 + $0x80] sm:$0xff]   ;;  %v1862_v35 = vld [vmem:[#allocation5 + $0x1f8] sm:$0xff]  }
  0x26   :  { %1675 = vmatpush3.bf16.msra.mxu1 %v1840_v11  ;;  %1654 = vmatprep.subr.bf16.mxu0 %v1841_v12  ;;  %1957 = vlog2.f32 %v41_v33  ;;  %v1863_v54 = vld [vmem:[#allocation5 + $0x138] sm:$0xff]   ;;  %v1865_v62 = vld [vmem:[#allocation5 + $0x170] sm:$0xff]   ;;  %v1869_v4 = vld [vmem:[#allocation5 + $0x168] sm:$0xff]  }
  0x27   :  { %1676 = vmatprep.subr.bf16.mxu1 %v1842_v13  ;;  %v1864_v55 = vld [vmem:[#allocation5 + $0x1b8] sm:$0xff]   ;;  %v1866_v63 = vld [vmem:[#allocation5 + $0x1f0] sm:$0xff]   ;;  %v1870_v5 = vld [vmem:[#allocation5 + $0x1e8] sm:$0xff]  }
  0x28   :  { %v1867_v0 = vld [vmem:[#allocation5 + $0x130] sm:$0xff]   ;;  %v1871_v6 = vld [vmem:[#allocation5 + $0x128] sm:$0xff]   ;;  %v1873_v8 = vld [vmem:[#allocation5 + $0x160] sm:$0xff]  }
  0x29   :  { %1655 = vmatpush3.bf16.msra.mxu0 %v1843_v14  ;;  %v1868_v3 = vld [vmem:[#allocation5 + $0x1b0] sm:$0xff]   ;;  %v1872_v7 = vld [vmem:[#allocation5 + $0x1a8] sm:$0xff]   ;;  %v1874_v9 = vld [vmem:[#allocation5 + $0x1e0] sm:$0xff]  }
  0x2a   :  { %1677 = vmatpush3.bf16.msra.mxu1 %v1844_v15  ;;  %1656 = vmatprep.subr.bf16.mxu0 %v1845_v16  ;;  %v1875_v10 = vld [vmem:[#allocation5 + $0x120] sm:$0xff]   ;;  %v1877_v12 = vld [vmem:[#allocation5 + $0x158] sm:$0xff]   ;;  %v1881_v16 = vld [vmem:[#allocation5 + $0x150] sm:$0xff]  }
  0x2b   :  { %1678 = vmatprep.subr.bf16.mxu1 %v1846_v17  ;;  %v1876_v11 = vld [vmem:[#allocation5 + $0x1a0] sm:$0xff]   ;;  %v1878_v13 = vld [vmem:[#allocation5 + $0x1d8] sm:$0xff]   ;;  %v1882_v17 = vld [vmem:[#allocation5 + $0x1d0] sm:$0xff]  }
  0x2c   :  { %v1879_v14 = vld [vmem:[#allocation5 + $0x118] sm:$0xff]   ;;  %v1897_v40 = vld [vmem:[#allocation5 + $0x270] sm:$0xff]  }
  0x2d   :  { %1657 = vmatpush3.bf16.msra.mxu0 %v1847_v18  ;;  %v1880_v15 = vld [vmem:[#allocation5 + $0x198] sm:$0xff]   ;;  %v1883_v18 = vld [vmem:[#allocation5 + $0x110] sm:$0xff]  }
  0x2e   :  { %1679 = vmatpush3.bf16.msra.mxu1 %v1848_v19  ;;  %1658 = vmatprep.subr.bf16.mxu0 %v1849_v20  ;;  %v1884_v19 = vld [vmem:[#allocation5 + $0x190] sm:$0xff]   ;;  %v1885_v20 = vld [vmem:[#allocation5 + $0x148] sm:$0xff]  }
  0x2f   :  { %1680 = vmatprep.subr.bf16.mxu1 %v1850_v21  ;;  %v1886_v21 = vld [vmem:[#allocation5 + $0x1c8] sm:$0xff]  }
  0x31   :  { %1659 = vmatpush3.bf16.msra.mxu0 %v1851_v22  ;;  %v1887_v22 = vld [vmem:[#allocation5 + $0x108] sm:$0xff]  }
  0x32   :  { %1681 = vmatpush3.bf16.msra.mxu1 %v1852_v23  ;;  %1660 = vmatprep.subr.bf16.mxu0 %v1853_v24  ;;  %v1888_v23 = vld [vmem:[#allocation5 + $0x188] sm:$0xff]   ;;  %v75_v24 = vsub.s32 4, %v2061_v41 }
  0x33   :  { %1682 = vmatprep.subr.bf16.mxu1 %v1854_v25  ;;  %v1958_v36 = vpop.eup %1957  ;;  %v83_v25 = vsub.s32 6, %v2061_v41 }
  0x34   :  { %v44_v37 = vmul.f32 0.6931472, %v1958_v36  ;;  %v1895_v36 = vld [vmem:[#allocation5 + $0x238] sm:$0xff]  }
  0x35   :  { %1661 = vmatpush3.bf16.msra.mxu0 %v1855_v26  ;;  %v40_v26 = vld [vmem:[#allocation2 + $0x8] sm:$0xff] }
  0x36   :  { %1683 = vmatpush3.bf16.msra.mxu1 %v1856_v27  ;;  %1662 = vmatprep.subr.bf16.mxu0 %v1857_v28  ;;  %v47_v38 = vmul.f32 4.6, %v44_v37  ;;  %v1889_v27 = vld [vmem:[#allocation5 + $0x140] sm:$0xff]  }
  0x37   :  { %1684 = vmatprep.subr.bf16.mxu1 %v1858_v29  ;;  %v1890_v28 = vld [vmem:[#allocation5 + $0x1c0] sm:$0xff]   ;;  %v42_v29 = vmax.f32 %v40_v26, 1e-08 }
  0x38   :  { %v49_v39 = vmul.f32 1.442695, %v47_v38 }
  0x39   :  { %1663 = vmatpush3.bf16.msra.mxu0 %v1859_v30  ;;  %v1891_v30 = vld [vmem:[#allocation5 + $0x100] sm:$0xff]  }
  0x3a   :  { %1685 = vmatpush3.bf16.msra.mxu1 %v1860_v31  ;;  %1692 = vmatprep.subr.bf16.mxu0 %v1861_v34  ;;  %1959 = vpow2.f32 %v49_v39  ;;  %v1892_v31 = vld [vmem:[#allocation5 + $0x180] sm:$0xff]   ;;  %v1893_v34 = vld [vmem:[#allocation5 + $0x278] sm:$0xff]  }
  0x3b   :  { %1714 = vmatprep.subr.bf16.mxu1 %v1862_v35  ;;  %1961 = vlog2.f32 %v42_v29  ;;  %v1894_v35 = vld [vmem:[#allocation5 + $0x2f8] sm:$0xff]  }
  0x3c   :  { %v1896_v39 = vld [vmem:[#allocation5 + $0x2b8] sm:$0xff]  }
  0x3d   :  { %v1928_v29 = vld [vmem:[#allocation5 + $0x3b8] sm:$0xff]  }
  0x47   :  { %v1960_v46 = vpop.eup %1959 }
  0x48   :  { %v2069_v49 = vmin.f32 %v1960_v46, 3e+38  ;;  %v1898_v46 = vld [vmem:[#allocation5 + $0x2f0] sm:$0xff]  }
  0x4a   :  { %v64_v50 = vrot.slane %v2069_v49, %v63_v42  ;;  %v72_v51 = vrot.slane %v2069_v49, %v71_v43  ;;  %v60_v52 = vrot.slane %v2069_v49, %v59_v44  ;;  %v68_v53 = vrot.slane %v2069_v49, %v67_v45 }
  0x4b   :  { %v80_v56 = vrot.slane %v2069_v49, %v79_v47  ;;  %v88_v57 = vrot.slane %v2069_v49, %v87_v48  ;;  %v76_v32 = vrot.slane %v2069_v49, %v75_v24  ;;  %v84_v33 = vrot.slane %v2069_v49, %v83_v25  ;;  %v1900_v49 = vld [vmem:[#allocation5 + $0x2b0] sm:$0xff]  }
  0x4c   :  { %v138_v58 = vpack.c.bf16 %v64_v50, %v64_v50  ;;  %v140_v59 = vpack.c.bf16 %v72_v51, %v72_v51  ;;  %v137_v60 = vpack.c.bf16 %v60_v52, %v60_v52  ;;  %v139_v61 = vpack.c.bf16 %v68_v53, %v68_v53  ;;  %v1899_v50 = vld [vmem:[#allocation5 + $0x230] sm:$0xff]   ;;  %v1901_v51 = vld [vmem:[#allocation5 + $0x268] sm:$0xff]  }
  0x4d   :  { %v142_v1 = vpack.c.bf16 %v80_v56, %v80_v56  ;;  %v144_v2 = vpack.c.bf16 %v88_v57, %v88_v57  ;;  %v141_v37 = vpack.c.bf16 %v76_v32, %v76_v32  ;;  %v143_v38 = vpack.c.bf16 %v84_v33, %v84_v33  ;;  %v1902_v52 = vld [vmem:[#allocation5 + $0x2e8] sm:$0xff]   ;;  %v1905_v56 = vld [vmem:[#allocation5 + $0x260] sm:$0xff]   ;;  %v1932_v32 = vld [vmem:[#allocation5 + $0x3b0] sm:$0xff]  }
  0x4e   :  { %1209 = vmatprep.mubr.bf16.mxu0 %v138_v58  ;;  %1249 = vmatprep.mubr.bf16.mxu1 %v140_v59  ;;  %v1903_v53 = vld [vmem:[#allocation5 + $0x228] sm:$0xff]   ;;  %v1906_v57 = vld [vmem:[#allocation5 + $0x2e0] sm:$0xff]  }
  0x4f   :  { %1210 = vmatmul.mubr.bf16.vlgmr.msra.gmra.mxu0 %v137_v60  ;;  %1250 = vmatmul.mubr.bf16.vlgmr.msra.gmra.mxu1 %v139_v61  ;;  %v1907_v59 = vld [vmem:[#allocation5 + $0x220] sm:$0xff]   ;;  %v1933_v33 = vld [vmem:[#allocation5 + $0x368] sm:$0xff]  }
  0x50   :  { %1693 = vmatpush3.bf16.msra.mxu0 %v1863_v54  ;;  %1715 = vmatpush3.bf16.msra.mxu1 %v1864_v55  ;;  %v1962_v54 = vpop.eup %1961  ;;  %v1904_v55 = vld [vmem:[#allocation5 + $0x2a8] sm:$0xff]   ;;  %v1908_v60 = vld [vmem:[#allocation5 + $0x2a0] sm:$0xff]  }
  0x51   :  { %1694 = vmatprep.subr.bf16.mxu0 %v1865_v62  ;;  %1716 = vmatprep.subr.bf16.mxu1 %v1866_v63  ;;  %v46_v58 = vmul.f32 0.6931472, %v1962_v54  ;;  %v1909_v62 = vld [vmem:[#allocation5 + $0x258] sm:$0xff]   ;;  %v1947_v54 = vld [vmem:[#allocation5 + $0x310] sm:$0xff]  }
  0x52   :  { %1289 = vmatprep.mubr.bf16.mxu0 %v142_v1  ;;  %1329 = vmatprep.mubr.bf16.mxu1 %v144_v2  ;;  %v1910_v63 = vld [vmem:[#allocation5 + $0x2d8] sm:$0xff]  }
  0x53   :  { %v48_v61 = vmul.f32 4.6, %v46_v58  ;;  %v1911_v1 = vld [vmem:[#allocation5 + $0x218] sm:$0xff]   ;;  %v1951_v58 = vld [vmem:[#allocation5 + $0x308] sm:$0xff]  }
  0x54   :  { %1695 = vmatpush3.bf16.msra.mxu0 %v1867_v0  ;;  %1717 = vmatpush3.bf16.msra.mxu1 %v1868_v3  ;;  %v1912_v2 = vld [vmem:[#allocation5 + $0x298] sm:$0xff]   ;;  %v1913_v3 = vld [vmem:[#allocation5 + $0x250] sm:$0xff]  }
  0x55   :  { %1696 = vmatprep.subr.bf16.mxu0 %v1869_v4  ;;  %1718 = vmatprep.subr.bf16.mxu1 %v1870_v5  ;;  %v51_v0 = vmul.f32 1.442695, %v48_v61  ;;  %v1914_v4 = vld [vmem:[#allocation5 + $0x2d0] sm:$0xff]   ;;  %v1954_v61 = vld [vmem:[#allocation5 + $0x3c0] sm:$0xff]  }
  0x56   :  { %v1915_v5 = vld [vmem:[#allocation5 + $0x210] sm:$0xff]  }
  0x57   :  { %1963 = vpow2.f32 %v51_v0  ;;  %v1955_v0 = vld [vmem:[#allocation5 + $0x300] sm:$0xff]  }
  0x58   :  { %1697 = vmatpush3.bf16.msra.mxu0 %v1871_v6  ;;  %1719 = vmatpush3.bf16.msra.mxu1 %v1872_v7  ;;  %v1916_v6 = vld [vmem:[#allocation5 + $0x290] sm:$0xff]   ;;  %v1917_v7 = vld [vmem:[#allocation5 + $0x248] sm:$0xff]  }
  0x59   :  { %1698 = vmatprep.subr.bf16.mxu0 %v1873_v8  ;;  %1720 = vmatprep.subr.bf16.mxu1 %v1874_v9  ;;  %v1918_v8 = vld [vmem:[#allocation5 + $0x2c8] sm:$0xff]  }
  0x5a   :  { %v1919_v9 = vld [vmem:[#allocation5 + $0x208] sm:$0xff]  }
  0x5c   :  { %1699 = vmatpush3.bf16.msra.mxu0 %v1875_v10  ;;  %1721 = vmatpush3.bf16.msra.mxu1 %v1876_v11  ;;  %v1920_v10 = vld [vmem:[#allocation5 + $0x288] sm:$0xff]   ;;  %v1921_v11 = vld [vmem:[#allocation5 + $0x240] sm:$0xff]  }
  0x5d   :  { %1700 = vmatprep.subr.bf16.mxu0 %v1877_v12  ;;  %1722 = vmatprep.subr.bf16.mxu1 %v1878_v13  ;;  %v1922_v12 = vld [vmem:[#allocation5 + $0x2c0] sm:$0xff]  }
  0x60   :  { %1701 = vmatpush3.bf16.msra.mxu0 %v1879_v14  ;;  %1723 = vmatpush3.bf16.msra.mxu1 %v1880_v15  ;;  %v1923_v14 = vld [vmem:[#allocation5 + $0x200] sm:$0xff]  }
  0x61   :  { %1702 = vmatprep.subr.bf16.mxu0 %v1881_v16  ;;  %1724 = vmatprep.subr.bf16.mxu1 %v1882_v17  ;;  %v1924_v15 = vld [vmem:[#allocation5 + $0x280] sm:$0xff]   ;;  %v1925_v17 = vld [vmem:[#allocation5 + $0x378] sm:$0xff]  }
  0x64   :  { %1703 = vmatpush3.bf16.msra.mxu0 %v1883_v18  ;;  %1725 = vmatpush3.bf16.msra.mxu1 %v1884_v19  ;;  %v1964_v13 = vpop.eup %1963  ;;  %v1926_v18 = vld [vmem:[#allocation5 + $0x3f8] sm:$0xff]  }
  0x65   :  { %1704 = vmatprep.subr.bf16.mxu0 %v1885_v20  ;;  %1726 = vmatprep.subr.bf16.mxu1 %v1886_v21  ;;  %v2097_v16 = vmin.f32 %v1964_v13, 3e+38 }
  0x67   :  { %v96_v19 = vrot.slane %v2097_v16, %v63_v42  ;;  %v104_v20 = vrot.slane %v2097_v16, %v71_v43  ;;  %v92_v21 = vrot.slane %v2097_v16, %v59_v44  ;;  %v120_v42 = vrot.slane %v2097_v16, %v87_v48  ;;  %v1931_v48 = vld [vmem:[#allocation5 + $0x330] sm:$0xff]  }
  0x68   :  { %1705 = vmatpush3.bf16.msra.mxu0 %v1887_v22  ;;  %1727 = vmatpush3.bf16.msra.mxu1 %v1888_v23  ;;  %v100_v22 = vrot.slane %v2097_v16, %v67_v45  ;;  %v112_v23 = vrot.slane %v2097_v16, %v79_v47  ;;  %v1930_v45 = vld [vmem:[#allocation5 + $0x3f0] sm:$0xff]  }
  0x69   :  { %1706 = vmatprep.subr.bf16.mxu0 %v1889_v27  ;;  %1728 = vmatprep.subr.bf16.mxu1 %v1890_v28  ;;  %v146_v26 = vpack.c.bf16 %v96_v19, %v96_v19  ;;  %v148_v43 = vpack.c.bf16 %v104_v20, %v104_v20  ;;  %v145_v27 = vpack.c.bf16 %v92_v21, %v92_v21  ;;  %v1927_v28 = vld [vmem:[#allocation5 + $0x338] sm:$0xff]  }
  0x6a   :  { %v147_v44 = vpack.c.bf16 %v100_v22, %v100_v22  ;;  %v152_v47 = vpack.c.bf16 %v120_v42, %v120_v42 }
  0x6c   :  { %1707 = vmatpush3.bf16.msra.mxu0 %v1891_v30  ;;  %1729 = vmatpush3.bf16.msra.mxu1 %v1892_v31  ;;  %v1929_v30 = vld [vmem:[#allocation5 + $0x370] sm:$0xff]   ;;  %v150_v31 = vpack.c.bf16 %v112_v23, %v112_v23 }
  0x6d   :  { %1736 = vmatprep.subr.bf16.mxu0 %v1893_v34  ;;  %1758 = vmatprep.subr.bf16.mxu1 %v1894_v35  ;;  %v1934_v34 = vld [vmem:[#allocation5 + $0x3e8] sm:$0xff]  }
  0x6e   :  { %v1935_v35 = vld [vmem:[#allocation5 + $0x328] sm:$0xff]  }
  0x6f   :  { %1290 = vmatmul.mubr.bf16.vlgmr.msra.gmra.mxu0 %v141_v37  ;;  %1330 = vmatmul.mubr.bf16.vlgmr.msra.gmra.mxu1 %v143_v38  ;;  %v1937_v37 = vld [vmem:[#allocation5 + $0x360] sm:$0xff]  }
  0x70   :  { %1737 = vmatpush3.bf16.msra.mxu0 %v1895_v36  ;;  %1759 = vmatpush3.bf16.msra.mxu1 %v1896_v39  ;;  %v1936_v36 = vld [vmem:[#allocation5 + $0x3a8] sm:$0xff]   ;;  %v1938_v38 = vld [vmem:[#allocation5 + $0x3e0] sm:$0xff]  }
  0x71   :  { %1738 = vmatprep.subr.bf16.mxu0 %v1897_v40  ;;  %1760 = vmatprep.subr.bf16.mxu1 %v1898_v46  ;;  %v1939_v39 = vld [vmem:[#allocation5 + $0x320] sm:$0xff]   ;;  %v1941_v46 = vld [vmem:[#allocation5 + $0x358] sm:$0xff]  }
  0x72   :  { %1369 = vmatprep.mubr.bf16.mxu0 %v146_v26  ;;  %1409 = vmatprep.mubr.bf16.mxu1 %v148_v43  ;;  %v1940_v40 = vld [vmem:[#allocation5 + $0x3a0] sm:$0xff]  }
  0x74   :  { %1739 = vmatpush3.bf16.msra.mxu0 %v1899_v50  ;;  %1761 = vmatpush3.bf16.msra.mxu1 %v1900_v49  ;;  %v1942_v50 = vld [vmem:[#allocation5 + $0x3d8] sm:$0xff]  }
  0x75   :  { %1740 = vmatprep.subr.bf16.mxu0 %v1901_v51  ;;  %1762 = vmatprep.subr.bf16.mxu1 %v1902_v52  ;;  %v1943_v49 = vld [vmem:[#allocation5 + $0x318] sm:$0xff]   ;;  %v1945_v52 = vld [vmem:[#allocation5 + $0x350] sm:$0xff]  }
  0x76   :  { %v1944_v51 = vld [vmem:[#allocation5 + $0x398] sm:$0xff]  }
  0x78   :  { %1741 = vmatpush3.bf16.msra.mxu0 %v1903_v53  ;;  %1763 = vmatpush3.bf16.msra.mxu1 %v1904_v55  ;;  %v1946_v53 = vld [vmem:[#allocation5 + $0x3d0] sm:$0xff]  }
  0x79   :  { %1742 = vmatprep.subr.bf16.mxu0 %v1905_v56  ;;  %1764 = vmatprep.subr.bf16.mxu1 %v1906_v57  ;;  %v1948_v55 = vld [vmem:[#allocation5 + $0x390] sm:$0xff]   ;;  %v1949_v56 = vld [vmem:[#allocation5 + $0x348] sm:$0xff]  }
  0x7a   :  { %v1950_v57 = vld [vmem:[#allocation5 + $0x3c8] sm:$0xff]  }
  0x7c   :  { %1743 = vmatpush3.bf16.msra.mxu0 %v1907_v59  ;;  %1765 = vmatpush3.bf16.msra.mxu1 %v1908_v60  ;;  %v1952_v59 = vld [vmem:[#allocation5 + $0x388] sm:$0xff]   ;;  %v1953_v60 = vld [vmem:[#allocation5 + $0x340] sm:$0xff]  }
  0x7d   :  { %1744 = vmatprep.subr.bf16.mxu0 %v1909_v62  ;;  %1766 = vmatprep.subr.bf16.mxu1 %v1910_v63  ;;  %v108_v62 = vrot.slane %v2097_v16, %v75_v24  ;;  %v116_v63 = vrot.slane %v2097_v16, %v83_v25 }
  0x80   :  { %1745 = vmatpush3.bf16.msra.mxu0 %v1911_v1  ;;  %1767 = vmatpush3.bf16.msra.mxu1 %v1912_v2  ;;  %v1956_v1 = vld [vmem:[#allocation5 + $0x380] sm:$0xff]   ;;  %v149_v2 = vpack.c.bf16 %v108_v62, %v108_v62 }
  0x81   :  { %1746 = vmatprep.subr.bf16.mxu0 %v1913_v3  ;;  %1768 = vmatprep.subr.bf16.mxu1 %v1914_v4  ;;  %v151_v3 = vpack.c.bf16 %v116_v63, %v116_v63 }
  0x84   :  { %1747 = vmatpush3.bf16.msra.mxu0 %v1915_v5  ;;  %1769 = vmatpush3.bf16.msra.mxu1 %v1916_v6 }
  0x85   :  { %1748 = vmatprep.subr.bf16.mxu0 %v1917_v7  ;;  %1770 = vmatprep.subr.bf16.mxu1 %v1918_v8 }
  0x88   :  { %1749 = vmatpush3.bf16.msra.mxu0 %v1919_v9  ;;  %1771 = vmatpush3.bf16.msra.mxu1 %v1920_v10 }
  0x89   :  { %1750 = vmatprep.subr.bf16.mxu0 %v1921_v11  ;;  %1772 = vmatprep.subr.bf16.mxu1 %v1922_v12 }
  0x8c   :  { %1751 = vmatpush3.bf16.msra.mxu0 %v1923_v14  ;;  %1773 = vmatpush3.bf16.msra.mxu1 %v1924_v15 }
  0x8d   :  { %1780 = vmatprep.subr.bf16.mxu0 %v1925_v17  ;;  %1802 = vmatprep.subr.bf16.mxu1 %v1926_v18 }
  0x8f   :  { %1370 = vmatmul.mubr.bf16.vlgmr.msra.gmra.mxu0 %v145_v27  ;;  %1410 = vmatmul.mubr.bf16.vlgmr.msra.gmra.mxu1 %v147_v44 }
  0x90   :  { %1781 = vmatpush3.bf16.msra.mxu0 %v1927_v28  ;;  %1803 = vmatpush3.bf16.msra.mxu1 %v1928_v29 }
  0x91   :  { %1782 = vmatprep.subr.bf16.mxu0 %v1929_v30  ;;  %1804 = vmatprep.subr.bf16.mxu1 %v1930_v45 }
  0x92   :  { %1449 = vmatprep.mubr.bf16.mxu0 %v150_v31  ;;  %1489 = vmatprep.mubr.bf16.mxu1 %v152_v47 }
  0x94   :  { %1783 = vmatpush3.bf16.msra.mxu0 %v1931_v48  ;;  %1805 = vmatpush3.bf16.msra.mxu1 %v1932_v32 }
  0x95   :  { %1784 = vmatprep.subr.bf16.mxu0 %v1933_v33  ;;  %1806 = vmatprep.subr.bf16.mxu1 %v1934_v34 }
  0x98   :  { %1785 = vmatpush3.bf16.msra.mxu0 %v1935_v35  ;;  %1807 = vmatpush3.bf16.msra.mxu1 %v1936_v36 }
  0x99   :  { %1786 = vmatprep.subr.bf16.mxu0 %v1937_v37  ;;  %1808 = vmatprep.subr.bf16.mxu1 %v1938_v38 }
  0x9c   :  { %1787 = vmatpush3.bf16.msra.mxu0 %v1939_v39  ;;  %1809 = vmatpush3.bf16.msra.mxu1 %v1940_v40 }
  0x9d   :  { %1788 = vmatprep.subr.bf16.mxu0 %v1941_v46  ;;  %1810 = vmatprep.subr.bf16.mxu1 %v1942_v50 }
  0xa0   :  { %1789 = vmatpush3.bf16.msra.mxu0 %v1943_v49  ;;  %1811 = vmatpush3.bf16.msra.mxu1 %v1944_v51 }
  0xa1   :  { %1790 = vmatprep.subr.bf16.mxu0 %v1945_v52  ;;  %1812 = vmatprep.subr.bf16.mxu1 %v1946_v53 }
  0xa4   :  { %1791 = vmatpush3.bf16.msra.mxu0 %v1947_v54  ;;  %1813 = vmatpush3.bf16.msra.mxu1 %v1948_v55 }
  0xa5   :  { %1792 = vmatprep.subr.bf16.mxu0 %v1949_v56  ;;  %1814 = vmatprep.subr.bf16.mxu1 %v1950_v57 }
  0xa8   :  { %1793 = vmatpush3.bf16.msra.mxu0 %v1951_v58  ;;  %1815 = vmatpush3.bf16.msra.mxu1 %v1952_v59 }
  0xa9   :  { %1794 = vmatprep.subr.bf16.mxu0 %v1953_v60  ;;  %1816 = vmatprep.subr.bf16.mxu1 %v1954_v61 }
  0xac   :  { %1795 = vmatpush3.bf16.msra.mxu0 %v1955_v0  ;;  %1817 = vmatpush3.bf16.msra.mxu1 %v1956_v1 }
  0xaf   :  { %1450 = vmatmul.mubr.bf16.vlgmr.msra.gmra.mxu0 %v149_v2  ;;  %1490 = vmatmul.mubr.bf16.vlgmr.msra.gmra.mxu1 %v151_v3 }
 0x10f   :  { %v1664_v4 = vpop.f32.mrf.mxu0  ;;  %v1686_v5 = vpop.f32.mrf.mxu1 }
 0x111   :  { %v1665_v6 = vpop.f32.mrf.mxu0  ;;  %v1687_v24 = vpop.f32.mrf.mxu1 }
 0x112   :  { %v1666_v7 = vadd.f32 %v1665_v6, %v1664_v4  ;;  %v1688_v41 = vadd.f32 %v1687_v24, %v1686_v5 }
 0x113   :  { %v1667_v8 = vpop.f32.mrf.mxu0  ;;  %v1689_v25 = vpop.f32.mrf.mxu1 }
 0x114   :  { %v1252_v9 = vadd.f32 %v1688_v41, %v1666_v7 }
 0x115   :  { %v1668_v10 = vpop.f32.mrf.mxu0  ;;  %v1690_v11 = vpop.f32.mrf.mxu1 }
 0x12f   :  { %v1708_v12 = vpop.f32.mrf.mxu0  ;;  %v1730_v13 = vpop.f32.mrf.mxu1 }
 0x131   :  { %v1709_v14 = vpop.f32.mrf.mxu0  ;;  %v1731_v15 = vpop.f32.mrf.mxu1 }
 0x132   :  { %v1710_v28 = vadd.f32 %v1709_v14, %v1708_v12  ;;  %v1732_v44 = vadd.f32 %v1731_v15, %v1730_v13 }
 0x133   :  { %v1711_v16 = vpop.f32.mrf.mxu0  ;;  %v1733_v17 = vpop.f32.mrf.mxu1 }
 0x134   :  { %v1292_v29 = vadd.f32 %v1710_v28, %v1252_v9 }
 0x135   :  { %v1712_v18 = vpop.f32.mrf.mxu0  ;;  %v1734_v19 = vpop.f32.mrf.mxu1 }
 0x136   :  { %v1332_v45 = vadd.f32 %v1732_v44, %v1292_v29 }
 0x14f   :  { %v1752_v20 = vpop.f32.mrf.mxu0  ;;  %v1774_v21 = vpop.f32.mrf.mxu1 }
 0x151   :  { %v1753_v22 = vpop.f32.mrf.mxu0  ;;  %v1775_v23 = vpop.f32.mrf.mxu1 }
 0x152   :  { %v1754_v30 = vadd.f32 %v1753_v22, %v1752_v20  ;;  %v1776_v47 = vadd.f32 %v1775_v23, %v1774_v21 }
 0x153   :  { %v1755_v42 = vpop.f32.mrf.mxu0  ;;  %v1777_v26 = vpop.f32.mrf.mxu1 }
 0x154   :  { %v1372_v31 = vadd.f32 %v1754_v30, %v1332_v45 }
 0x155   :  { %v1756_v43 = vpop.f32.mrf.mxu0  ;;  %v1778_v27 = vpop.f32.mrf.mxu1 }
 0x156   :  { %v1412_v35 = vadd.f32 %v1776_v47, %v1372_v31 }
 0x16f   :  { %v1796_v48 = vpop.f32.mrf.mxu0  ;;  %v1818_v32 = vpop.f32.mrf.mxu1 }
 0x171   :  { %v1797_v33 = vpop.f32.mrf.mxu0  ;;  %v1819_v34 = vpop.f32.mrf.mxu1 }
 0x172   :  { %v1798_v36 = vadd.f32 %v1797_v33, %v1796_v48  ;;  %v1820_v40 = vadd.f32 %v1819_v34, %v1818_v32 }
 0x173   :  { %v1799_v37 = vpop.f32.mrf.mxu0  ;;  %v1821_v38 = vpop.f32.mrf.mxu1 }
 0x174   :  { %v1452_v39 = vadd.f32 %v1798_v36, %v1412_v35 }
 0x175   :  { %v1800_v46 = vpop.f32.mrf.mxu0  ;;  %v1822_v50 = vpop.f32.mrf.mxu1 }
 0x176   :  { %v1492_v49 = vadd.f32 %v1820_v40, %v1452_v39 }
 0x178   :  { %v1497_v51 = vmul.f32 0.0625, %v1492_v49 }
 0x17a   :  { %1965 = vlog2.f32 %v1497_v51 }
 0x187   :  { %v1966_v52 = vpop.eup %1965 }
 0x188   :  { %v1499_v53 = vmul.f32 0.6931472, %v1966_v52 }
 0x18a   :  { %v1500_v54 = vmul.f32 0.2173913, %v1499_v53 }
 0x18c   :  { %v1501_v55 = vmul.f32 1.442695, %v1500_v54 }
 0x18e   :  { %1967 = vpow2.f32 %v1501_v55 }
 0x19b   :  { %v1968_v56 = vpop.eup %1967 }
 0x19c   :  { %1503 = vst [vmem:[#allocation7] sm:$0x1] %v1968_v56 }
 0x19d   :  { %2020 = shalt.err (!%p2017_p0)
}
 0x19e   :  { %1513 = dma.vmem_to_hbm [thread:$0]  %s1511_s1, 16, %s2128_s2, [#allocation4]  }
 0x19f   :  { %2033 = dma.done.wait [#allocation4], 16  }
 0x1a0   :  { %2034 = vsyncadd [#allocation4], 4294967280 }
 0x1a1   :  { %1517 = vsyncpa [#allocation3], 1 }
 0x1a2   :  { %1518 = vsyncpa [#allocation6], 1 }
 0x1a3   :  { %1519 = vsyncpa [#allocation4], 1 }

</bundles_post_ra>
